<compile_context>
chip_gen: v7x
topology: tpu7x:2x2x1
jax: 0.10.0
libtpu: 0.0.40
codegen_flags: <defaults>
</compile_context>

<pallas_src>
import jax
import jax.numpy as jnp
from jax import lax
from jax.experimental import pallas as pl
from jax.experimental.pallas import tpu as pltpu


def _round_up(x, m):
    return ((x + m - 1) // m) * m


def dcn_block_kernel(x0_ref, xl_ref, w_ref, b_ref, out_ref):
    """One (TB, TN) output tile.

    x0_ref : (TB, TN)  tile of x0
    xl_ref : (TB, Dp)  full-feature rows of xl (resident across the j axis)
    w_ref  : (TN, Dp)  rows [j*TN, (j+1)*TN) of W in PyTorch (out, in) layout
    b_ref  : (1, TN)   bias slice
    out_ref: (TB, TN)
    """
    tn = out_ref.shape[1]
    j = pl.program_id(1)

    xl_full = xl_ref[...]                                    # (TB, Dp)

    # Linear: xl @ W.T  ==  dot_general contracting xl dim 1 with W dim 1 (MXU).
    lin = lax.dot_general(
        xl_full, w_ref[...],
        dimension_numbers=(((1,), (1,)), ((), ())),
        preferred_element_type=jnp.float32)                  # (TB, TN) f32
    lin = lin + b_ref[...].astype(jnp.float32)               # (1, TN) broadcast

    # Residual / gating slice of this feature block (128-aligned dynamic slice).
    col0 = pl.multiple_of(j * tn, 128)
    xl_blk = xl_ref[:, pl.ds(col0, tn)]                      # (TB, TN)
    x0_blk = x0_ref[...]                                     # (TB, TN)

    # cross_fea = x0 * mlp(xl) + xl   (f32 epilogue, cast only at the store)
    out_ref[...] = (x0_blk.astype(jnp.float32) * lin
                    + xl_blk.astype(jnp.float32)).astype(out_ref.dtype)


def dcn_block(x0, xl, w, b, *, tb=512, param_dtype=None,
              vmem_budget_bytes=48 * 1024 * 1024):
    """DCNBlock forward: returns (x0, cross_fea) exactly like the torch module.

    x0, xl : (B, D)
    w      : (D, D) PyTorch nn.Linear weight (out_features, in_features)
    b      : (D,)   bias
    """
    B, D = x0.shape
    assert xl.shape == (B, D) and w.shape == (D, D) and b.shape == (D,)

    if param_dtype is not None:   # e.g. jnp.bfloat16 on v6e/v7x
        w = w.astype(param_dtype)

    # ---- tile / padding geometry -------------------------------------------
    dp = _round_up(D, 128)                          # lane-dense feature dim

    # Feature (output-N) tile: keep the whole weight resident when it fits the
    # budget, otherwise pick the largest 128-multiple divisor of dp that does.
    w_bytes = jnp.dtype(w.dtype).itemsize
    weight_budget = vmem_budget_bytes // 2          # leave half for activations
    tn = dp
    while tn > 128 and 2 * tn * dp * w_bytes > weight_budget:
        cand = tn - 128
        while cand > 128 and dp % cand != 0:
            cand -= 128
        tn = cand

    # Batch tile: start at `tb` rows, shrink (multiples of 8) until the whole
    # double-buffered working set fits the budget.
    act_bytes = jnp.dtype(x0.dtype).itemsize

    def _footprint(tb_, tn_):
        return (2 * tb_ * tn_ * act_bytes            # x0 tiles
                + 2 * tb_ * dp * act_bytes           # xl full-feature rows
                + 2 * tn_ * dp * w_bytes             # weight block
                + 2 * tn_ * 4                        # bias
                + 2 * tb_ * tn_ * act_bytes)         # out tiles

    tb = min(tb, _round_up(B, 8))
    while tb > 8 and _footprint(tb, tn) > vmem_budget_bytes:
        tb = max(8, _round_up(tb // 2, 8))

    bp = _round_up(B, tb)
    nb, nj = bp // tb, dp // tn

    # ---- pad ragged edges (keeps the big tiles; padded region is sliced off) --
    if (bp, dp) != (B, D):
        x0p = jnp.pad(x0, ((0, bp - B), (0, dp - D)))
        xlp = jnp.pad(xl, ((0, bp - B), (0, dp - D)))
        wp = jnp.pad(w, ((0, dp - D), (0, dp - D)))
        bpad = jnp.pad(b, (0, dp - D))
    else:
        x0p, xlp, wp, bpad = x0, xl, w, b
    b2 = bpad.reshape(1, dp)

    vmem_limit = int(min(max(_footprint(tb, tn) * 5 // 4 + (4 << 20), 32 << 20),
                         100 << 20))

    cross_fea = pl.pallas_call(
        dcn_block_kernel,
        out_shape=jax.ShapeDtypeStruct((bp, dp), x0.dtype),
        grid_spec=pltpu.PrefetchScalarGridSpec(
            num_scalar_prefetch=0,
            grid=(nb, nj),
            in_specs=[
                pl.BlockSpec((tb, tn), lambda i, j: (i, j)),   # x0 tile
                pl.BlockSpec((tb, dp), lambda i, j: (i, 0)),   # xl full-K rows
                pl.BlockSpec((tn, dp), lambda i, j: (j, 0)),   # weight rows (out,in)
                pl.BlockSpec((1, tn), lambda i, j: (0, j)),    # bias slice
            ],
            out_specs=pl.BlockSpec((tb, tn), lambda i, j: (i, j)),
        ),
        compiler_params=pltpu.CompilerParams(
            dimension_semantics=("parallel", "arbitrary"),
            vmem_limit_bytes=vmem_limit),
    )(x0p, xlp, wp, b2)

    if (bp, dp) != (B, D):
        cross_fea = cross_fea[:B, :D]

    # Module returns (x0, cross_fea)
    return x0, cross_fea


if __name__ == "__main__":
    key = jax.random.PRNGKey(0)
    k0, k1, k2, k3 = jax.random.split(key, 4)

    B, D = 8, 32   # batch=8, in_dim=32 (small demo; kernel pads D -> 128 lanes)

    x0 = jax.random.normal(k0, (B, D), dtype=jnp.float32)
    xl = jax.random.normal(k1, (B, D), dtype=jnp.float32)

    # Deterministic parameter init (mimics nn.Linear uniform(-1/sqrt(D), 1/sqrt(D)))
    bound = 1.0 / jnp.sqrt(jnp.float32(D))
    w = jax.random.uniform(k2, (D, D), dtype=jnp.float32, minval=-bound, maxval=bound)
    b = jax.random.uniform(k3, (D,), dtype=jnp.float32, minval=-bound, maxval=bound)

    x0_out, cross_fea = dcn_block(x0, xl, w, b)
    jax.block_until_ready(cross_fea)

    # Reference check in plain JAX
    ref = x0 * (xl @ w.T + b) + xl
    assert jnp.allclose(cross_fea, ref, atol=1e-5, rtol=1e-5), "mismatch vs reference"
    assert jnp.array_equal(x0_out, x0)

    print("KERNEL_OK")
</pallas_src>

<mosaic_0001>
module attributes {stable_mosaic.version = 11 : i64} {
  func.func @dcn_block_kernel(%arg0: i32, %arg1: i32, %arg2: memref<8x128xf32, #tpu.memory_space<vmem>>, %arg3: memref<8x128xf32, #tpu.memory_space<vmem>>, %arg4: memref<128x128xf32, #tpu.memory_space<vmem>>, %arg5: memref<1x128xf32, #tpu.memory_space<vmem>>, %arg6: memref<8x128xf32, #tpu.memory_space<vmem>>) attributes {dimension_semantics = [#tpu.dimension_semantics<parallel>, #tpu.dimension_semantics<arbitrary>], iteration_bounds = array<i64: 1, 1>, scalar_prefetch = 0 : i64, scratch_operands = 0 : i64, tpu.core_type = #tpu.core_type<tc>, window_params = [{transform_indices = @transform_0, window_bounds = array<i64: 8, 128>}, {transform_indices = @transform_1, window_bounds = array<i64: 8, 128>}, {transform_indices = @transform_2, window_bounds = array<i64: 128, 128>}, {transform_indices = @transform_3, window_bounds = array<i64: 1, 128>}, {transform_indices = @transform_4, window_bounds = array<i64: 8, 128>}]} {
    %c0 = arith.constant 0 : index
    %c0_0 = arith.constant 0 : index
    %0 = vector.load %arg3[%c0, %c0_0] : memref<8x128xf32, #tpu.memory_space<vmem>>, vector<8x128xf32>
    %c0_1 = arith.constant 0 : index
    %c0_2 = arith.constant 0 : index
    %1 = vector.load %arg4[%c0_1, %c0_2] : memref<128x128xf32, #tpu.memory_space<vmem>>, vector<128x128xf32>
    %cst = arith.constant dense<0.000000e+00> : vector<8x128xf32>
    %2 = tpu.matmul %0, %1, %cst {dimension_numbers = #tpu.dot_dimension_numbers<[1], [1], [0], [0], [0, 0, 1, 0], [], []>} : vector<8x128xf32>, vector<128x128xf32>, vector<8x128xf32> -> vector<8x128xf32>
    %c0_3 = arith.constant 0 : index
    %c0_4 = arith.constant 0 : index
    %3 = vector.load %arg5[%c0_3, %c0_4] : memref<1x128xf32, #tpu.memory_space<vmem>>, vector<1x128xf32>
    %4 = vector.broadcast %3 : vector<1x128xf32> to vector<8x128xf32>
    %5 = arith.addf %2, %4 : vector<8x128xf32>
    %c128_i32 = arith.constant 128 : i32
    %6 = arith.muli %arg1, %c128_i32 : i32
    %7 = tpu.assume_multiple %6, 128 : i32
    %c0_5 = arith.constant 0 : index
    %8 = arith.index_cast %7 : i32 to index
    %9 = vector.load %arg3[%c0_5, %8] : memref<8x128xf32, #tpu.memory_space<vmem>>, vector<8x128xf32>
    %c0_6 = arith.constant 0 : index
    %c0_7 = arith.constant 0 : index
    %10 = vector.load %arg2[%c0_6, %c0_7] : memref<8x128xf32, #tpu.memory_space<vmem>>, vector<8x128xf32>
    %11 = arith.mulf %10, %5 : vector<8x128xf32>
    %12 = arith.addf %11, %9 : vector<8x128xf32>
    %c0_8 = arith.constant 0 : index
    %c0_9 = arith.constant 0 : index
    %13 = vector.load %arg6[%c0_8, %c0_9] : memref<8x128xf32, #tpu.memory_space<vmem>>, vector<8x128xf32>
    tpu.vector_store %arg6[%c0_8, %c0_9], %12 {strides = array<i32>} : memref<8x128xf32, #tpu.memory_space<vmem>>, vector<8x128xf32>,
    return
  }
  func.func @transform_0(%arg0: i32, %arg1: i32) -> (i32, i32) {
    %c0_i32 = arith.constant 0 : i32
    return %arg0, %arg1 : i32, i32
  }
  func.func @transform_1(%arg0: i32, %arg1: i32) -> (i32, i32) {
    %c0_i32 = arith.constant 0 : i32
    %c0_i32_0 = arith.constant 0 : i32
    return %arg0, %c0_i32 : i32, i32
  }
  func.func @transform_2(%arg0: i32, %arg1: i32) -> (i32, i32) {
    %c0_i32 = arith.constant 0 : i32
    %c0_i32_0 = arith.constant 0 : i32
    return %arg1, %c0_i32 : i32, i32
  }
  func.func @transform_3(%arg0: i32, %arg1: i32) -> (i32, i32) {
    %c0_i32 = arith.constant 0 : i32
    %c0_i32_0 = arith.constant 0 : i32
    return %c0_i32, %arg1 : i32, i32
  }
  func.func @transform_4(%arg0: i32, %arg1: i32) -> (i32, i32) {
    %c0_i32 = arith.constant 0 : i32
    return %arg0, %arg1 : i32, i32
  }
}

</mosaic_0001>

<bundles_post_ra>
// kernel: tpu_custom_call.1
= control target key start
LH: loop header
LB: loop body
LE: loop exit
PB: predicated region body
PF: predicated region fallthrough
CT: control target
= control target key end

     0   :  { %9 = vsyncpa [#allocation3], 0  ;;  %s440_s0 = inlined_call_operand.hbm [shape: f32[8,128], index: 0, kind: input, shape index: {}]   ;;  %s441_s1 = inlined_call_operand.hbm [shape: f32[8,128], index: 1, kind: input, shape index: {}]   ;;  %s442_s2 = inlined_call_operand.hbm [shape: f32[128,128], index: 2, kind: input, shape index: {}]   ;;  %s443_s3 = inlined_call_operand.vmem [shape: f32[1,128], index: 3, kind: input, shape index: {}]   ;;  %s444_s4 = inlined_call_operand.hbm [shape: f32[8,128], index: 4, kind: output, shape index: {}]  }
   0x1   :  { %10 = vsyncpa [#allocation6], 0 }
   0x2   :  { %11 = vsyncpa [#allocation4], 0  ;;  %s355_s15 = smov [#allocation5]   ;;  %s356_s17 = smov [#allocation2]  }
   0x3   :  { %s28_s16 = sshll.u32 %s355_s15, 4  ;;  %s18_s18 = sshll.u32 %s356_s17, 4  ;;  %s29_s16 = int_to_ptr.vmem [resolvable:$true] %s28_s16  ;;  %s19_s18 = int_to_ptr.vmem [resolvable:$true] %s18_s18 }
   0x4   :  { %s261_s21 = scalar_lea.hbm %s441_s1, 128 }
   0x5   :  { %p262_p0 = scmp.ne.s32.totalorder %s441_s1, %s261_s21  ;;  %p265_p1 = scmp.lt.u32.totalorder %s261_s21, %s441_s1 }
   0x7   :  { %p267_p2 = pnand %p265_p1, %p262_p0 }
   0x9   :  { %270 = shalt.err (!%p267_p2)
}
   0xa   :  { %s271_s26 = scalar_lea.vmem %s29_s16, 128  ;;  %p276_p4 = scmp.lt.s32.totalorder %s29_s16, %s29_s16 }
   0xb   :  { %p272_p3 = scmp.ne.s32.totalorder %s29_s16, %s271_s26  ;;  %p277_p5 = scmp.lt.s32.totalorder %s271_s26, %s271_s26 }
   0xd   :  { %p278_p6 = por %p277_p5, %p276_p4 }
   0xf   :  { %p279_p7 = pnand %p278_p6, %p272_p3 }
  0x11   :  { %282 = shalt.err (!%p279_p7)
}
  0x12   :  { %31 = dma.hbm_to_vmem [thread:$0]  %s441_s1, 128, %s29_s16, [#allocation6]  }
  0x13   :  { %s283_s5 = scalar_lea.hbm %s440_s0, 128 }
  0x14   :  { %p284_p8 = scmp.ne.s32.totalorder %s440_s0, %s283_s5  ;;  %p287_p9 = scmp.lt.u32.totalorder %s283_s5, %s440_s0 }
  0x16   :  { %p289_p10 = pnand %p287_p9, %p284_p8 }
  0x18   :  { %292 = shalt.err (!%p289_p10)
}
  0x19   :  { %s293_s10 = scalar_lea.vmem %s19_s18, 128  ;;  %p298_p12 = scmp.lt.s32.totalorder %s19_s18, %s19_s18 }
  0x1a   :  { %p294_p11 = scmp.ne.s32.totalorder %s19_s18, %s293_s10  ;;  %p299_p13 = scmp.lt.s32.totalorder %s293_s10, %s293_s10 }
  0x1c   :  { %p300_p0 = por %p299_p13, %p298_p12 }
  0x1e   :  { %p301_p1 = pnand %p300_p0, %p294_p11 }
  0x20   :  { %304 = shalt.err (!%p301_p1)
}
  0x21   :  { %21 = dma.hbm_to_vmem [thread:$0]  %s440_s0, 128, %s19_s18, [#allocation3]  }
  0x22   :  { %s357_s12 = smov [#allocation7]   ;;  %s305_s16 = scalar_lea.hbm %s442_s2, 2048 }
  0x23   :  { %s37_s13 = sshll.u32 %s357_s12, 4  ;;  %p306_p2 = scmp.ne.s32.totalorder %s442_s2, %s305_s16  ;;  %s38_s13 = int_to_ptr.vmem [resolvable:$true] %s37_s13 }
  0x24   :  { %p309_p3 = scmp.lt.u32.totalorder %s305_s16, %s442_s2 }
  0x26   :  { %p311_p4 = pnand %p309_p3, %p306_p2 }
  0x28   :  { %314 = shalt.err (!%p311_p4)
}
  0x29   :  { %s315_s22 = scalar_lea.vmem %s38_s13, 2048  ;;  %p320_p6 = scmp.lt.s32.totalorder %s38_s13, %s38_s13 }
  0x2a   :  { %p316_p5 = scmp.ne.s32.totalorder %s38_s13, %s315_s22  ;;  %p321_p7 = scmp.lt.s32.totalorder %s315_s22, %s315_s22 }
  0x2c   :  { %p322_p8 = por %p321_p7, %p320_p6 }
  0x2e   :  { %p323_p9 = pnand %p322_p8, %p316_p5 }
  0x30   :  { %326 = shalt.err (!%p323_p9)
}
  0x31   :  { %s358_s0 = smov 128   ;;  %s359_s18 = smov 8  }
  0x32   :  { %43 = dma.hbm_to_vmem [thread:$0]  %s442_s2, 2048, %s38_s13, [#allocation6], %s358_s0, %s358_s0, %s359_s18  }
  0x33   :  { %349 = dma.done.wait [#allocation3], 128  }
  0x34   :  { %350 = vsyncadd [#allocation3], 4294967168 }
  0x35   :  { %351 = dma.done.wait [#allocation6], 2176  }
  0x36   :  { %352 = vsyncadd [#allocation6], 4294965120  ;;  %v360_v0 = vmov 0.0|0.0   ;;  %vm361_vm0 = vmmov 0   ;;  %v362_v1 = vmov 0.0   ;;  %v56_v2 = vld [vmem:[#allocation7] sm:$0xff] }
  0x37   :  { %228 = vmatprep.subr.bf16.mxu0 %v360_v0  ;;  %225 = vmatprep.mubr.msk.f32.mxu0 %vm361_vm0, %v362_v1  ;;  %v57_v3 = vld [vmem:[#allocation7 + $0x8] sm:$0xff]  ;;  %v58_v5 = vld [vmem:[#allocation7 + $0x10] sm:$0xff]  ;;  %v59_v6 = vld [vmem:[#allocation7 + $0x18] sm:$0xff]  ;;  %s363_s26 = smov [#allocation8]  }
  0x38   :  { %v229_v4 = vpack.c.bf16 %v57_v3, %v56_v2  ;;  %v232_v7 = vpack.c.bf16 %v59_v6, %v58_v5  ;;  %v60_v8 = vld [vmem:[#allocation7 + $0x20] sm:$0xff]  ;;  %v61_v9 = vld [vmem:[#allocation7 + $0x28] sm:$0xff]  ;;  %v62_v11 = vld [vmem:[#allocation7 + $0x30] sm:$0xff]  ;;  %s164_s27 = sshll.u32 %s363_s26, 4  ;;  %s165_s27 = int_to_ptr.vmem [resolvable:$true] %s164_s27 }
  0x39   :  { %v235_v10 = vpack.c.bf16 %v61_v9, %v60_v8  ;;  %v63_v12 = vld [vmem:[#allocation7 + $0x38] sm:$0xff]  ;;  %v64_v14 = vld [vmem:[#allocation7 + $0x40] sm:$0xff]  ;;  %v65_v15 = vld [vmem:[#allocation7 + $0x48] sm:$0xff]  ;;  %s327_s28 = scalar_lea.vmem %s165_s27, 128  ;;  %p332_p11 = scmp.lt.s32.totalorder %s165_s27, %s165_s27 }
  0x3a   :  { %230 = vmatpush3.bf16.xpose.msra.mxu0 %v229_v4  ;;  %v238_v13 = vpack.c.bf16 %v63_v12, %v62_v11  ;;  %v241_v16 = vpack.c.bf16 %v65_v15, %v64_v14  ;;  %v66_v17 = vld [vmem:[#allocation7 + $0x50] sm:$0xff]  ;;  %v67_v18 = vld [vmem:[#allocation7 + $0x58] sm:$0xff]  ;;  %v68_v20 = vld [vmem:[#allocation7 + $0x60] sm:$0xff]  ;;  %p328_p10 = scmp.ne.s32.totalorder %s165_s27, %s327_s28  ;;  %p333_p12 = scmp.lt.s32.totalorder %s327_s28, %s327_s28 }
  0x3b   :  { %231 = vmatprep.subr.bf16.mxu0 %v360_v0  ;;  %v244_v19 = vpack.c.bf16 %v67_v18, %v66_v17  ;;  %v69_v21 = vld [vmem:[#allocation7 + $0x68] sm:$0xff]  ;;  %v70_v23 = vld [vmem:[#allocation7 + $0x70] sm:$0xff]  ;;  %v71_v24 = vld [vmem:[#allocation7 + $0x78] sm:$0xff] }
  0x3c   :  { %v247_v22 = vpack.c.bf16 %v69_v21, %v68_v20  ;;  %v250_v25 = vpack.c.bf16 %v71_v24, %v70_v23  ;;  %v55_v26 = vld [vmem:[#allocation5] sm:$0xff]  ;;  %v175_v27 = vld [vmem:[%s443_s3] ss:$0 sm:$0xff]  ;;  %p334_p13 = por %p333_p12, %p332_p11 }
  0x3d   :  { %v154_v29 = vld [vmem:[#allocation2] sm:$0xff] }
  0x3e   :  { %p335_p0 = pnand %p334_p13, %p328_p10 }
  0x42   :  { %233 = vmatpush3.bf16.xpose.msra.mxu0 %v232_v7 }
  0x43   :  { %234 = vmatprep.subr.bf16.mxu0 %v360_v0 }
  0x4a   :  { %236 = vmatpush3.bf16.xpose.msra.mxu0 %v235_v10 }
  0x4b   :  { %237 = vmatprep.subr.bf16.mxu0 %v360_v0 }
  0x52   :  { %239 = vmatpush3.bf16.xpose.msra.mxu0 %v238_v13 }
  0x53   :  { %240 = vmatprep.subr.bf16.mxu0 %v360_v0 }
  0x5a   :  { %242 = vmatpush3.bf16.xpose.msra.mxu0 %v241_v16 }
  0x5b   :  { %243 = vmatprep.subr.bf16.mxu0 %v360_v0 }
  0x62   :  { %245 = vmatpush3.bf16.xpose.msra.mxu0 %v244_v19 }
  0x63   :  { %246 = vmatprep.subr.bf16.mxu0 %v360_v0 }
  0x6a   :  { %248 = vmatpush3.bf16.xpose.msra.mxu0 %v247_v22 }
  0x6b   :  { %249 = vmatprep.subr.bf16.mxu0 %v360_v0 }
  0x72   :  { %251 = vmatpush3.bf16.xpose.msra.mxu0 %v250_v25 }
  0x79   :  { %226 = vmatmul.mubr.f32.vlgmr.msra.gmra.mrb[0].mxu0 %v55_v26 }
 0x14c   :  { %v145_v28 = vpop.f32.mrb[0].mxu0 }
 0x14d   :  { %v146_v30 = vadd.f32 %v175_v27, %v145_v28  ;;  %v227_v31 = vpop.f32.mrb[1].mxu0 }
 0x14f   :  { %v155_v32 = vmul.f32 %v154_v29, %v146_v30 }
 0x151   :  { %v156_v33 = vadd.f32 %v155_v32, %v55_v26 }
 0x153   :  { %157 = vst [vmem:[#allocation8] sm:$0xff] %v156_v33 }
 0x154   :  { %338 = shalt.err (!%p335_p0)
}
 0x155   :  { %s339_s3 = scalar_lea.hbm %s444_s4, 128 }
 0x156   :  { %p340_p1 = scmp.ne.s32.totalorder %s444_s4, %s339_s3  ;;  %p343_p2 = scmp.lt.u32.totalorder %s339_s3, %s444_s4 }
 0x158   :  { %p345_p3 = pnand %p343_p2, %p340_p1 }
 0x15a   :  { %348 = shalt.err (!%p345_p3)
}
 0x15b   :  { %167 = dma.vmem_to_hbm [thread:$0]  %s165_s27, 128, %s444_s4, [#allocation4]  }
 0x15c   :  { %353 = dma.done.wait [#allocation4], 128  }
 0x15d   :  { %354 = vsyncadd [#allocation4], 4294967168 }
 0x15e   :  { %171 = vsyncpa [#allocation3], 1 }
 0x15f   :  { %172 = vsyncpa [#allocation6], 1 }
 0x160   :  { %173 = vsyncpa [#allocation4], 1 }

</bundles_post_ra>
